<compile_context>
chip_gen: v5e
topology: v5e:2x2
jax: 0.10.0
libtpu: 0.0.40
codegen_flags: <defaults>
</compile_context>

<pallas_src>
import functools

import jax
import jax.numpy as jnp
from jax.experimental import pallas as pl
from jax.experimental.pallas import tpu as pltpu


def _round_up(n, m):
    return ((n + m - 1) // m) * m


def _make_kernel(Bt, chunk, n_chunks, low_precision_softplus):
    """Build the fused 1x1conv -> ReLU -> 1x1conv -> Softplus kernel.

    Block shapes seen by the kernel:
      x_ref : (Bt, C_in, tm)      pixel tile (channels on sublanes)
      w1_ref: (mlp_dim, C_in)
      b1_ref: (mlp_dim, 1)
      w2_ref: (n_bins, mlp_dim)
      b2_ref: (n_bins, 1)
      o_ref : (Bt, n_bins, tm)
    with tm == n_chunks * chunk. All loops are static (fully unrolled).
    """

    def kernel(x_ref, w1_ref, b1_ref, w2_ref, b2_ref, o_ref):
        # Hoist weight/bias loads out of the loops (loop-invariant).
        w1 = w1_ref[...]
        w2 = w2_ref[...]
        b1 = b1_ref[...].astype(jnp.float32)   # (mlp_dim, 1)
        b2 = b2_ref[...].astype(jnp.float32)   # (n_bins, 1)

        for bi in range(Bt):
            for c in range(n_chunks):
                s = c * chunk                                  # static offset
                xc = x_ref[bi, :, pl.ds(s, chunk)]             # (C_in, chunk)

                # Layer 1: weight-stationary matmul on the MXU, f32 accum.
                h = jnp.dot(w1, xc, preferred_element_type=jnp.float32)
                h = jnp.maximum(h + b1, 0.0)                   # ReLU, f32
                h = h.astype(w2.dtype)                         # MXU dtype

                # Layer 2 + Softplus (PyTorch semantics: beta=1, threshold=20).
                y = jnp.dot(w2, h, preferred_element_type=jnp.float32) + b2
                if low_precision_softplus:
                    # bf16 EUP path (v6e/v7x): halves transcendental cost.
                    z = jnp.minimum(y, 20.0).astype(jnp.bfloat16)
                    sp = jnp.log1p(jnp.exp(z)).astype(jnp.float32)
                else:
                    sp = jnp.log1p(jnp.exp(jnp.minimum(y, 20.0)))
                out = jnp.where(y > 20.0, y, sp)               # (n_bins, chunk)

                o_ref[bi, :, pl.ds(s, chunk)] = out.astype(o_ref.dtype)

    return kernel


def seein_regressor_unnormed(x, w1, b1, w2, b2, *, tile_m=8192):
    """x: (B, C_in, H, W) NCHW; weights as from nn.Conv2d(.., 1, 1, 0).

    w1: (mlp_dim, C_in, 1, 1), b1: (mlp_dim,)
    w2: (n_bins, mlp_dim, 1, 1), b2: (n_bins,)
    Returns (B_centers, B_centers), each (B, n_bins, H, W).
    """
    B, C_in, H, W = x.shape
    mlp_dim = w1.shape[0]
    n_bins = w2.shape[0]
    HW = H * W
    dsize = jnp.dtype(x.dtype).itemsize

    # Free reshapes (no transpose, no extra HBM round-trips).
    x3 = x.reshape(B, C_in, HW)
    w1_m = w1.reshape(mlp_dim, C_in)
    w2_m = w2.reshape(n_bins, mlp_dim)
    b1_c = b1.reshape(mlp_dim, 1)
    b2_c = b2.reshape(n_bins, 1)

    # ---- generation-aware VMEM budget (v5e/v6e: 128 MiB, v7x: 64 MiB) ----
    try:
        vmem_cap = int(pltpu.get_tpu_info().vmem_capacity_bytes)
    except Exception:
        vmem_cap = 64 * 1024 * 1024          # conservative fallback
    usable = max(32 * 1024 * 1024, int(vmem_cap * 0.8))

    # ---- tiling plan ----
    target = max(int(tile_m), 512)           # target pixels per grid step
    if HW <= target:
        tm = HW                              # full spatial row (always legal)
    else:
        tm = _round_up(target, 128)          # lane-dense tile; ragged tail OK
    Bt = min(B, max(1, target // max(tm, 1)), 32)   # batch rows per block
    n_tiles = pl.cdiv(HW, tm)

    # Megacore (v7x has 2 TCs): ensure >= 2 parallel programs when possible.
    if pl.cdiv(B, Bt) * n_tiles < 2:
        if B >= 2:
            Bt = (B + 1) // 2
        elif tm >= 256 and tm % 256 == 0:
            tm //= 2
            n_tiles = pl.cdiv(HW, tm)
    n_b_tiles = pl.cdiv(B, Bt)

    # Fixed-size compute chunks: decouple f32 intermediates from tile size.
    chunk = next((c for c in (512, 256, 128) if tm % c == 0), tm)
    n_chunks = tm // chunk

    def vmem_est(bt):
        cin_p = _round_up(C_in, 8)
        nb_p = _round_up(n_bins, 8)
        mlp_p = _round_up(mlp_dim, 8)
        tiles = 2 * bt * (cin_p + nb_p) * tm * dsize            # dbl-buffered I/O
        weights = 2 * dsize * (mlp_p * _round_up(C_in, 128)     # dbl-buffered,
                               + nb_p * _round_up(mlp_dim, 128) # lane-padded
                               + (mlp_p + nb_p) * 128)          # padded biases
        inter = 3 * (mlp_p + nb_p) * chunk * 4                  # f32 temporaries
        return tiles + weights + inter + (2 << 20)              # Mosaic scratch slack

    while vmem_est(Bt) > usable and Bt > 1:                     # safety valve
        Bt = max(1, Bt // 2)
    n_b_tiles = pl.cdiv(B, Bt)
    est = vmem_est(Bt)
    vmem_limit = int(min(usable, max(2 * est, 32 * 1024 * 1024)))

    n_pix = B * HW
    cost = pl.CostEstimate(
        flops=2 * n_pix * C_in * mlp_dim + 2 * n_pix * mlp_dim * n_bins,
        transcendentals=2 * n_pix * n_bins,
        bytes_accessed=n_pix * (C_in + n_bins) * dsize
        + (mlp_dim * C_in + n_bins * mlp_dim + mlp_dim + n_bins) * dsize,
    )

    kernel = _make_kernel(
        Bt, chunk, n_chunks,
        low_precision_softplus=(jnp.dtype(x.dtype) == jnp.bfloat16))

    out3 = pl.pallas_call(
        kernel,
        out_shape=jax.ShapeDtypeStruct((B, n_bins, HW), x.dtype),
        grid_spec=pltpu.PrefetchScalarGridSpec(
            num_scalar_prefetch=0,
            grid=(n_b_tiles, n_tiles),
            in_specs=[
                pl.BlockSpec((Bt, C_in, tm), lambda b, i: (b, 0, i)),
                pl.BlockSpec((mlp_dim, C_in), lambda b, i: (0, 0)),
                pl.BlockSpec((mlp_dim, 1), lambda b, i: (0, 0)),
                pl.BlockSpec((n_bins, mlp_dim), lambda b, i: (0, 0)),
                pl.BlockSpec((n_bins, 1), lambda b, i: (0, 0)),
            ],
            out_specs=pl.BlockSpec((Bt, n_bins, tm), lambda b, i: (b, 0, i)),
        ),
        compiler_params=pltpu.CompilerParams(
            dimension_semantics=("parallel", "parallel"),
            vmem_limit_bytes=vmem_limit),
        cost_estimate=cost,
    )(x3, w1_m, b1_c, w2_m, b2_c)

    b_centers = out3.reshape(B, n_bins, H, W)
    # Module returns the same tensor twice.
    return b_centers, b_centers


def _reference(x, w1, b1, w2, b2):
    """Plain-JAX reference matching the PyTorch forward."""
    B, C_in, H, W = x.shape
    mlp_dim, n_bins = w1.shape[0], w2.shape[0]
    xr = x.reshape(B, C_in, H * W).astype(jnp.float32)
    h = jnp.einsum('oc,bcp->bop', w1.reshape(mlp_dim, C_in), xr)
    h = jnp.maximum(h + b1[None, :, None], 0.0)
    y = jnp.einsum('oc,bcp->bop', w2.reshape(n_bins, mlp_dim), h)
    y = y + b2[None, :, None]
    y = jnp.where(y > 20.0, y, jnp.log1p(jnp.exp(jnp.minimum(y, 20.0))))
    return y.reshape(B, n_bins, H, W).astype(x.dtype)


if __name__ == "__main__":
    # Small shapes consistent with the module's forward.
    B, in_features, H, W = 2, 4, 16, 16
    mlp_dim, n_bins = 32, 16

    key = jax.random.PRNGKey(0)
    kx, k1, k2, k3, k4 = jax.random.split(key, 5)

    x = jax.random.normal(kx, (B, in_features, H, W), dtype=jnp.float32)
    # Deterministic parameter init (shapes follow nn.Conv2d 1x1).
    w1 = jax.random.normal(k1, (mlp_dim, in_features, 1, 1), jnp.float32) * 0.1
    b1 = jax.random.normal(k2, (mlp_dim,), jnp.float32) * 0.1
    w2 = jax.random.normal(k3, (n_bins, mlp_dim, 1, 1), jnp.float32) * 0.1
    b2 = jax.random.normal(k4, (n_bins,), jnp.float32) * 0.1

    fn = jax.jit(functools.partial(seein_regressor_unnormed, tile_m=8192))
    out1, out2 = fn(x, w1, b1, w2, b2)
    jax.block_until_ready((out1, out2))

    ref = _reference(x, w1, b1, w2, b2)
    assert out1.shape == (B, n_bins, H, W)
    assert out2.shape == (B, n_bins, H, W)
    # Tolerance covers possible MXU default-precision (bf16-operand) rounding
    # differences between the Pallas dots and the XLA reference einsums.
    assert jnp.allclose(out1, ref, atol=2e-3, rtol=2e-3)
    assert jnp.allclose(out2, ref, atol=2e-3, rtol=2e-3)

    print("KERNEL_OK")
</pallas_src>

<mosaic_0001>
module attributes {stable_mosaic.version = 11 : i64} {
  func.func @kernel(%arg0: i32, %arg1: i32, %arg2: memref<1x4x256xf32, #tpu.memory_space<vmem>>, %arg3: memref<32x4xf32, #tpu.memory_space<vmem>>, %arg4: memref<32x1xf32, #tpu.memory_space<vmem>>, %arg5: memref<16x32xf32, #tpu.memory_space<vmem>>, %arg6: memref<16x1xf32, #tpu.memory_space<vmem>>, %arg7: memref<1x16x256xf32, #tpu.memory_space<vmem>>) attributes {dimension_semantics = [#tpu.dimension_semantics<parallel>, #tpu.dimension_semantics<parallel>], iteration_bounds = array<i64: 2, 1>, scalar_prefetch = 0 : i64, scratch_operands = 0 : i64, tpu.core_type = #tpu.core_type<tc>, window_params = [{transform_indices = @transform_0, window_bounds = array<i64: 1, 4, 256>}, {pipeline_mode = #tpu.pipeline_mode<synchronous>, transform_indices = @transform_1, window_bounds = array<i64: 32, 4>}, {pipeline_mode = #tpu.pipeline_mode<synchronous>, transform_indices = @transform_2, window_bounds = array<i64: 32, 1>}, {pipeline_mode = #tpu.pipeline_mode<synchronous>, transform_indices = @transform_3, window_bounds = array<i64: 16, 32>}, {pipeline_mode = #tpu.pipeline_mode<synchronous>, transform_indices = @transform_4, window_bounds = array<i64: 16, 1>}, {transform_indices = @transform_5, window_bounds = array<i64: 1, 16, 256>}]} {
    %c0 = arith.constant 0 : index
    %c0_0 = arith.constant 0 : index
    %0 = vector.load %arg3[%c0, %c0_0] : memref<32x4xf32, #tpu.memory_space<vmem>>, vector<32x4xf32>
    %c0_1 = arith.constant 0 : index
    %c0_2 = arith.constant 0 : index
    %1 = vector.load %arg5[%c0_1, %c0_2] : memref<16x32xf32, #tpu.memory_space<vmem>>, vector<16x32xf32>
    %c0_3 = arith.constant 0 : index
    %c0_4 = arith.constant 0 : index
    %2 = vector.load %arg4[%c0_3, %c0_4] : memref<32x1xf32, #tpu.memory_space<vmem>>, vector<32x1xf32>
    %c0_5 = arith.constant 0 : index
    %c0_6 = arith.constant 0 : index
    %3 = vector.load %arg6[%c0_5, %c0_6] : memref<16x1xf32, #tpu.memory_space<vmem>>, vector<16x1xf32>
    %c0_7 = arith.constant 0 : index
    %c0_8 = arith.constant 0 : index
    %c0_9 = arith.constant 0 : index
    %4 = vector.load %arg2[%c0_7, %c0_8, %c0_9] : memref<1x4x256xf32, #tpu.memory_space<vmem>>, vector<1x4x256xf32>
    %5 = vector.shape_cast %4 : vector<1x4x256xf32> to vector<4x256xf32>
    %cst = arith.constant dense<0.000000e+00> : vector<32x256xf32>
    %6 = tpu.matmul %0, %5, %cst {dimension_numbers = #tpu.dot_dimension_numbers<[1], [0], [0], [1], [0, 0, 1, 1], [], []>} : vector<32x4xf32>, vector<4x256xf32>, vector<32x256xf32> -> vector<32x256xf32>
    %7 = vector.broadcast %2 : vector<32x1xf32> to vector<32x256xf32>
    %8 = arith.addf %6, %7 : vector<32x256xf32>
    %cst_10 = arith.constant 0.000000e+00 : f32
    %9 = vector.broadcast %cst_10 : f32 to vector<32x256xf32>
    %10 = arith.maximumf %8, %9 : vector<32x256xf32>
    %cst_11 = arith.constant dense<0.000000e+00> : vector<16x256xf32>
    %11 = tpu.matmul %1, %10, %cst_11 {dimension_numbers = #tpu.dot_dimension_numbers<[1], [0], [0], [1], [0, 0, 1, 1], [], []>} : vector<16x32xf32>, vector<32x256xf32>, vector<16x256xf32> -> vector<16x256xf32>
    %12 = vector.broadcast %3 : vector<16x1xf32> to vector<16x256xf32>
    %13 = arith.addf %11, %12 : vector<16x256xf32>
    %cst_12 = arith.constant 2.000000e+01 : f32
    %14 = vector.broadcast %cst_12 : f32 to vector<16x256xf32>
    %15 = arith.minimumf %13, %14 : vector<16x256xf32>
    %16 = math.exp %15 : vector<16x256xf32>
    %17 = math.log1p %16 : vector<16x256xf32>
    %cst_13 = arith.constant 2.000000e+01 : f32
    %18 = vector.broadcast %cst_13 : f32 to vector<16x256xf32>
    %19 = arith.cmpf ogt, %13, %18 : vector<16x256xf32>
    %20 = arith.select %19, %13, %17 : vector<16x256xi1>, vector<16x256xf32>
    %c0_14 = arith.constant 0 : index
    %c0_15 = arith.constant 0 : index
    %c0_16 = arith.constant 0 : index
    %21 = vector.load %arg7[%c0_14, %c0_15, %c0_16] : memref<1x16x256xf32, #tpu.memory_space<vmem>>, vector<1x16x256xf32>
    %22 = vector.shape_cast %21 : vector<1x16x256xf32> to vector<16x256xf32>
    %23 = vector.shape_cast %20 : vector<16x256xf32> to vector<1x16x256xf32>
    tpu.vector_store %arg7[%c0_14, %c0_15, %c0_16], %23 {strides = array<i32>} : memref<1x16x256xf32, #tpu.memory_space<vmem>>, vector<1x16x256xf32>,
    return
  }
  func.func @transform_0(%arg0: i32, %arg1: i32) -> (i32, i32, i32) {
    %c0_i32 = arith.constant 0 : i32
    %c0_i32_0 = arith.constant 0 : i32
    return %arg0, %c0_i32, %arg1 : i32, i32, i32
  }
  func.func @transform_1(%arg0: i32, %arg1: i32) -> (i32, i32) {
    %c0_i32 = arith.constant 0 : i32
    %c0_i32_0 = arith.constant 0 : i32
    %c0_i32_1 = arith.constant 0 : i32
    return %c0_i32, %c0_i32_0 : i32, i32
  }
  func.func @transform_2(%arg0: i32, %arg1: i32) -> (i32, i32) {
    %c0_i32 = arith.constant 0 : i32
    %c0_i32_0 = arith.constant 0 : i32
    %c0_i32_1 = arith.constant 0 : i32
    return %c0_i32, %c0_i32_0 : i32, i32
  }
  func.func @transform_3(%arg0: i32, %arg1: i32) -> (i32, i32) {
    %c0_i32 = arith.constant 0 : i32
    %c0_i32_0 = arith.constant 0 : i32
    %c0_i32_1 = arith.constant 0 : i32
    return %c0_i32, %c0_i32_0 : i32, i32
  }
  func.func @transform_4(%arg0: i32, %arg1: i32) -> (i32, i32) {
    %c0_i32 = arith.constant 0 : i32
    %c0_i32_0 = arith.constant 0 : i32
    %c0_i32_1 = arith.constant 0 : i32
    return %c0_i32, %c0_i32_0 : i32, i32
  }
  func.func @transform_5(%arg0: i32, %arg1: i32) -> (i32, i32, i32) {
    %c0_i32 = arith.constant 0 : i32
    %c0_i32_0 = arith.constant 0 : i32
    return %arg0, %c0_i32, %arg1 : i32, i32, i32
  }
}

</mosaic_0001>

<bundles_post_ra>
// kernel: seein_regressor_unnormed.1
= control target key start
LH: loop header
LB: loop body
LE: loop exit
PB: predicated region body
PF: predicated region fallthrough
CT: control target
= control target key end

     0   :  { %s721_s18 = smov 0   ;;  %s723_s19 = smov 0   ;;  %s805_s0 = inlined_call_operand.vmem [shape: f32[2,4,256], index: 0, kind: input, shape index: {}]   ;;  %s806_s1 = inlined_call_operand.vmem [shape: f32[32,4], index: 1, kind: input, shape index: {}]   ;;  %s807_s2 = inlined_call_operand.vmem [shape: f32[32,1], index: 2, kind: input, shape index: {}]   ;;  %s808_s3 = inlined_call_operand.vmem [shape: f32[16,32], index: 3, kind: input, shape index: {}]   ;;  %s809_s4 = inlined_call_operand.vmem [shape: f32[16,1], index: 4, kind: input, shape index: {}]   ;;  %s810_s5 = inlined_call_operand.vmem [shape: f32[2,16,256], index: 5, kind: output, shape index: {}]  }
   0x1   :  { %s725_s20 = smov 0  }
   0x2 LB: > { %s27_s21 = sadd.s32 1, %s684_s19  ;;  %p599_p0 = scmp.ge.s32.totalorder %s688_s20, 1  ;;  %s688_s20 = sphi %s725_s20, %s15_s20   ;;  %s684_s19 = sphi %s723_s19, %s812_s19   ;;  %s680_s18 = sphi %s721_s18, %s811_s18  }
   0x3   : > { %p29_p1 = scmp.ge.s32.totalorder %s27_s21, 2  ;;  %p208_p2 = scmp.lt.s32.totalorder %s688_s20, 3 }
   0x5   : > { %s814_s21 = smov (%p29_p1, %s27_s21), 0  ;;  %p209_p3 = pnand %p599_p0, %p208_p2 }
   0x6   : > { %p245_p4 = scmp.lt.s32.totalorder (!%p209_p3), %s680_s18, 1 }
   0x7   : > { %212 = sbr.rel (%p209_p3) target bundleno = 356 (0x164), region = 40 }
   0xc   : > { %v271_v0 = vld [vmem:[%s807_s2 + $0x8] sm:$0xff]  ;;  %v690_v1 = vmov 0   ;;  %s816_s18 = smov (!%p245_p4, %s680_s18), 1  ;;  %v273_v2 = vld [vmem:[%s807_s2 + $0x18] sm:$0xff]  ;;  %v270_v4 = vld [vmem:[%s807_s2] sm:$0xff]  ;;  %vm314_vm0 = vcmask 1043456  }
   0xd   : > { %648 = vset.pattern.permute.xlu1 %v690_v1  ;;  %647 = vset.pattern.permute.xlu0 %v690_v1  ;;  %s620_s26 = sshll.u32 %s816_s18, 3  ;;  %v272_v5 = vld [vmem:[%s807_s2 + $0x10] sm:$0xff]  ;;  %v264_v6 = vld [vmem:[%s806_s1] sm:$0xff]  ;;  %vm301_vm1 = vcmask 31744   ;;  %v265_v9 = vld [vmem:[%s806_s1 + $0x8] sm:$0xff]  ;;  %vm395_vm2 = vcmask 261120  }
   0xe   : > { %284 = vperm.xlu1 %648, %v271_v0   ;;  %649 = vset.pattern.permute.xlu2 %v690_v1  ;;  %s252_s29 = scalar_lea.vmem %s805_s0, %s620_s26  ;;  %v266_v10 = vld [vmem:[%s806_s1 + $0x10] sm:$0xff]  ;;  %v267_v11 = vld [vmem:[%s806_s1 + $0x18] sm:$0xff]  ;;  %v274_v17 = vld [vmem:[%s809_s4] sm:$0xff] }
   0xf   : > { %294 = vperm.xlu0 %647, %v273_v2   ;;  %v276_v3 = vld [vmem:[%s252_s29] sm:$0xff]  ;;  %387 = vperm.xlu2 %649, %v274_v17   ;;  %v275_v21 = vld [vmem:[%s809_s4 + $0x8] sm:$0xff]  ;;  %s621_s29 = sshll.u32 %s816_s18, 5 }
  0x10   : > { %298 = vst [vmem:[#allocation1] ss:$2 sm:$0xff] %v276_v3  ;;  %v268_v42 = vld [vmem:[%s808_s3] sm:$0xff]  ;;  %v269_v43 = vld [vmem:[%s808_s3 + $0x8] sm:$0xff]  ;;  %s788_s7 = scalar_lea.vmem %s810_s5, %s621_s29 }
  0x16   : > { %279 = vperm.xlu1 %648, %v270_v4  }
  0x17   : > { %289 = vperm.xlu0 %647, %v272_v5   ;;  %v299_v7 = vld.sshfl [vmem:[#allocation1] sm:$0xff pattern:$0x75316420]  ;;  %v300_v8 = vld.sshfl [vmem:[#allocation1 + $0x8] sm:$0xff pattern:$0x75316420]  ;;  %392 = vperm.xlu2 %649, %v275_v21  }
  0x18   : > { %604 = vmatpush.msk.msra.mxu0 %vm314_vm0, %v299_v7  ;;  %609 = vmatpush.msk.msra.mxu1 %vm314_vm0, %v300_v8 }
  0x19   : > { %605 = vmatmul.msk.f32.vlgmr.msra.gmra.mxu0 %vm301_vm1, %v264_v6  ;;  %610 = vmatmul.msk.f32.vlgmr.msra.gmra.mxu1 %vm301_vm1, %v264_v6 }
  0x21   : > { %606 = vmatmul.msk.f32.gmra.mxu0 %vm301_vm1, %v265_v9  ;;  %611 = vmatmul.msk.f32.gmra.mxu1 %vm301_vm1, %v265_v9 }
  0x29   : > { %607 = vmatmul.msk.f32.gmra.mxu0 %vm301_vm1, %v266_v10  ;;  %612 = vmatmul.msk.f32.gmra.mxu1 %vm301_vm1, %v266_v10 }
  0x31   : > { %608 = vmatmul.msk.f32.gmra.mxu0 %vm301_vm1, %v267_v11  ;;  %613 = vmatmul.msk.f32.gmra.mxu1 %vm301_vm1, %v267_v11 }
  0x69   : > { %v388_v44 = vpop.permute.xlu2 %387 }
  0x71   : > { %v393_v53 = vpop.permute.xlu2 %392 }
  0x80   : > { %v285_v18 = vpop.permute.xlu1 %284 }
  0x81   : > { %v295_v16 = vpop.permute.xlu0 %294 }
  0x88   : > { %v280_v29 = vpop.permute.xlu1 %279 }
  0x89   : > { %v290_v22 = vpop.permute.xlu0 %289 }
  0x96   : > { %v336_v12 = vpop.f32.mrf.mxu0  ;;  %v365_v13 = vpop.f32.mrf.mxu1 }
  0x97   : > { %v337_v34 = vadd.f32 %v336_v12, %v280_v29  ;;  %v366_v35 = vadd.f32 %v365_v13, %v280_v29 }
  0x99   : > { %v377_v40 = vmax.f32 %v337_v34, 0.0  ;;  %v378_v41 = vmax.f32 %v366_v35, 0.0 }
  0x9e   : > { %v339_v14 = vpop.f32.mrf.mxu0  ;;  %v368_v15 = vpop.f32.mrf.mxu1 }
  0x9f   : > { %v340_v30 = vadd.f32 %v339_v14, %v285_v18  ;;  %v369_v31 = vadd.f32 %v368_v15, %v285_v18 }
  0xa1   : > { %v379_v38 = vmax.f32 %v340_v30, 0.0  ;;  %v380_v39 = vmax.f32 %v369_v31, 0.0 }
  0xa6   : > { %v342_v19 = vpop.f32.mrf.mxu0  ;;  %v371_v20 = vpop.f32.mrf.mxu1 }
  0xa7   : > { %v343_v25 = vadd.f32 %v342_v19, %v290_v22  ;;  %v372_v26 = vadd.f32 %v371_v20, %v290_v22 }
  0xa9   : > { %v381_v36 = vmax.f32 %v343_v25, 0.0  ;;  %v382_v37 = vmax.f32 %v372_v26, 0.0 }
  0xae   : > { %v345_v23 = vpop.f32.mrf.mxu0  ;;  %v374_v24 = vpop.f32.mrf.mxu1 }
  0xaf   : > { %v346_v27 = vadd.f32 %v345_v23, %v295_v16  ;;  %v375_v28 = vadd.f32 %v374_v24, %v295_v16 }
  0xb1   : > { %v383_v32 = vmax.f32 %v346_v27, 0.0  ;;  %v384_v33 = vmax.f32 %v375_v28, 0.0 }
  0xb3   : > { %414 = vmatpush.msra.mxu2 %v383_v32  ;;  %437 = vmatpush.msra.mxu3 %v384_v33 }
  0xb5   : > { %415 = vmatpush.msra.mxu2 %v381_v36  ;;  %438 = vmatpush.msra.mxu3 %v382_v37 }
  0xb7   : > { %416 = vmatpush.msra.mxu2 %v379_v38  ;;  %439 = vmatpush.msra.mxu3 %v380_v39 }
  0xb9   : > { %417 = vmatpush.msra.mxu2 %v377_v40  ;;  %440 = vmatpush.msra.mxu3 %v378_v41 }
  0xba   : > { %614 = vmatmul.msk.f32.vlgmr.msra.gmra.mxu2 %vm395_vm2, %v268_v42  ;;  %616 = vmatmul.msk.f32.vlgmr.msra.gmra.mxu3 %vm395_vm2, %v268_v42 }
  0xc2   : > { %615 = vmatmul.msk.f32.gmra.mxu2 %vm395_vm2, %v269_v43  ;;  %617 = vmatmul.msk.f32.gmra.mxu3 %vm395_vm2, %v269_v43 }
 0x13d   : > { %v419_v45 = vpop.f32.mrf.mxu2  ;;  %v442_v46 = vpop.f32.mrf.mxu3 }
 0x13e   : > { %v420_v47 = vadd.f32 %v419_v45, %v388_v44  ;;  %v443_v48 = vadd.f32 %v442_v46, %v388_v44 }
 0x140   : > { %v448_v49 = vmin.f32 %v420_v47, 20.0  ;;  %v449_v50 = vmin.f32 %v443_v48, 20.0  ;;  %vm496_vm4 = vcmp.gt.f32.partialorder %v420_v47, 20.0  ;;  %vm497_vm6 = vcmp.gt.f32.partialorder %v443_v48, 20.0 }
 0x142   : > { %v452_v51 = vmul.f32 1.442695, %v448_v49  ;;  %v454_v52 = vmul.f32 1.442695, %v449_v50 }
 0x144   : > { %650 = vpow2.f32 %v452_v51 }
 0x145   : > { %652 = vpow2.f32 %v454_v52  ;;  %v422_v54 = vpop.f32.mrf.mxu2  ;;  %v445_v55 = vpop.f32.mrf.mxu3 }
 0x146   : > { %v423_v56 = vadd.f32 %v422_v54, %v393_v53  ;;  %v781_v57 = vadd.f32 %v445_v55, %v393_v53 }
 0x148   : > { %v450_v58 = vmin.f32 %v423_v56, 20.0  ;;  %v451_v59 = vmin.f32 %v781_v57, 20.0  ;;  %vm498_vm8 = vcmp.gt.f32.partialorder %v423_v56, 20.0  ;;  %vm499_vm10 = vcmp.gt.f32.partialorder %v781_v57, 20.0 }
 0x14a   : > { %v651_v60 = vpop.eup %650  ;;  %v456_v61 = vmul.f32 1.442695, %v450_v58  ;;  %v458_v0 = vmul.f32 1.442695, %v451_v59 }
 0x14b   : > { %v653_v62 = vpop.eup %652  ;;  %v460_v63 = vadd.f32 1.0, %v651_v60  ;;  %v463_v1 = vmul.f32 -0.5, %v651_v60  ;;  %v466_v5 = vand.u32 2147483647, %v651_v60 }
 0x14c   : > { %v469_v2 = vadd.f32 1.0, %v653_v62  ;;  %654 = vpow2.f32 %v456_v61  ;;  %v472_v3 = vmul.f32 -0.5, %v653_v62  ;;  %v475_v8 = vand.u32 2147483647, %v653_v62 }
 0x14d   : > { %656 = vlog2.f32 %v460_v63  ;;  %v464_v4 = vadd.f32 1.0, %v463_v1  ;;  %vm467_vm3 = vcmp.lt.f32.partialorder %v466_v5, 0.0004427343 }
 0x14e   : > { %658 = vlog2.f32 %v469_v2  ;;  %v473_v6 = vadd.f32 1.0, %v472_v3  ;;  %vm476_vm5 = vcmp.lt.f32.partialorder %v475_v8, 0.0004427343 }
 0x14f   : > { %660 = vpow2.f32 %v458_v0  ;;  %v465_v13 = vmul.f32 %v651_v60, %v464_v4 }
 0x150   : > { %v474_v17 = vmul.f32 %v653_v62, %v473_v6 }
 0x152   : > { %v655_v7 = vpop.eup %654 }
 0x153   : > { %v657_v9 = vpop.eup %656  ;;  %v478_v10 = vadd.f32 1.0, %v655_v7  ;;  %v481_v14 = vmul.f32 -0.5, %v655_v7  ;;  %v484_v25 = vand.u32 2147483647, %v655_v7 }
 0x154   : > { %v659_v11 = vpop.eup %658  ;;  %v462_v12 = vmul.f32 0.6931472, %v657_v9 }
 0x155   : > { %v661_v15 = vpop.eup %660  ;;  %v471_v16 = vmul.f32 0.6931472, %v659_v11  ;;  %662 = vlog2.f32 %v478_v10  ;;  %v482_v24 = vadd.f32 1.0, %v481_v14  ;;  %vm485_vm7 = vcmp.lt.f32.partialorder %v484_v25, 0.0004427343 }
 0x156   : > { %v468_v18 = vsel %vm467_vm3, %v465_v13, %v462_v12  ;;  %v487_v19 = vadd.f32 1.0, %v661_v15  ;;  %v490_v22 = vmul.f32 -0.5, %v661_v15  ;;  %v493_v30 = vand.u32 2147483647, %v661_v15 }
 0x157   : > { %v500_v20 = vsel %vm496_vm4, %v420_v47, %v468_v18  ;;  %v477_v21 = vsel %vm476_vm5, %v474_v17, %v471_v16  ;;  %v483_v29 = vmul.f32 %v655_v7, %v482_v24 }
 0x158   : > { %504 = vst [vmem:[%s788_s7] sm:$0xff] %v500_v20  ;;  %v501_v23 = vsel %vm497_vm6, %v443_v48, %v477_v21  ;;  %664 = vlog2.f32 %v487_v19  ;;  %v491_v27 = vadd.f32 1.0, %v490_v22  ;;  %vm494_vm9 = vcmp.lt.f32.partialorder %v493_v30, 0.0004427343 }
 0x159   : > { %505 = vst [vmem:[%s788_s7 + $0x8] sm:$0xff] %v501_v23 }
 0x15a   : > { %v492_v35 = vmul.f32 %v661_v15, %v491_v27 }
 0x15b   : > { %v663_v26 = vpop.eup %662 }
 0x15c   : > { %v480_v28 = vmul.f32 0.6931472, %v663_v26 }
 0x15e   : > { %v665_v31 = vpop.eup %664  ;;  %v486_v32 = vsel %vm485_vm7, %v483_v29, %v480_v28 }
 0x15f   : > { %v502_v33 = vsel %vm498_vm8, %v423_v56, %v486_v32  ;;  %v489_v34 = vmul.f32 0.6931472, %v665_v31 }
 0x160   : > { %506 = vst [vmem:[%s788_s7 + $0x10] sm:$0xff] %v502_v33 }
 0x161   : > { %v495_v36 = vsel %vm494_vm9, %v492_v35, %v489_v34 }
 0x162   : > { %v503_v37 = vsel %vm499_vm10, %v781_v57, %v495_v36 }
 0x163   : > { %507 = vst [vmem:[%s788_s7 + $0x18] sm:$0xff] %v503_v37 }
 0x164 PF: > { %s15_s20 = sadd.s32 1, %s688_s20   ;;  %s811_s18 = smov %s684_s19 }
 0x165   : > { %p12_p5 = scmp.ge.s32.totalorder %s15_s20, 4   ;;  %s812_s19 = smov %s814_s21 }
 0x167   :  { %14 = sbr.rel (!%p12_p5) target bundleno = 2 (0x2), region = 70 }

</bundles_post_ra>
